<compile_context>
chip_gen: v5e
topology: v5e:2x2
jax: 0.10.0
libtpu: 0.0.40
codegen_flags: <defaults>
</compile_context>

<pallas_src>
import functools

import jax
import jax.numpy as jnp
from jax.experimental import pallas as pl
from jax.experimental.pallas import tpu as pltpu


def _round_up(v, m):
    return ((v + m - 1) // m) * m


# ----------------------------------------------------------------------------
# FAST path: whole (N, c_tile, HW) channel slab resident in VMEM. 1R + 1W of x.
# ----------------------------------------------------------------------------
def _bn_resident_kernel(x_ref, gamma_ref, beta_ref, o_ref, *, eps, count):
    x = x_ref[...].astype(jnp.float32)                      # (N, c_tile, HW)
    inv_cnt = jnp.float32(1.0 / count)
    # two-pass (mean-centred) statistics: better precision than E[x^2]-E[x]^2
    ps = jnp.sum(x, axis=2, keepdims=True)                  # (N, c_tile, 1)
    mean = jnp.sum(ps, axis=0, keepdims=True) * inv_cnt     # (1, c_tile, 1)
    xc = x - mean
    ps2 = jnp.sum(xc * xc, axis=2, keepdims=True)           # (N, c_tile, 1)
    var = jnp.sum(ps2, axis=0, keepdims=True) * inv_cnt     # (1, c_tile, 1)
    a = gamma_ref[...][None, :, :] * jax.lax.rsqrt(var + jnp.float32(eps))
    b = beta_ref[...][None, :, :]
    o_ref[...] = (a * xc + b).astype(o_ref.dtype)


# ----------------------------------------------------------------------------
# TILED path: two-phase streaming kernel. 2R + 1W of x (out-of-core minimum+1R).
# ----------------------------------------------------------------------------
def _bn_tiled_kernel(x_ref, gamma_ref, beta_ref, o_ref,
                     sum_ref, sumsq_ref, scale_ref, shift_ref,
                     *, eps, count, hw, s_tile, mask_lanes):
    # grid = (c, phase, n, s)
    p = pl.program_id(1)
    n = pl.program_id(2)
    s = pl.program_id(3)
    last_n = pl.num_programs(2) - 1
    last_s = pl.num_programs(3) - 1

    # ---- phase 0, first step of this channel block: zero accumulators ----
    @pl.when(jnp.logical_and(p == 0, jnp.logical_and(n == 0, s == 0)))
    def _init():
        sum_ref[...] = jnp.zeros_like(sum_ref)
        sumsq_ref[...] = jnp.zeros_like(sumsq_ref)

    def _acc(xv):
        # lane reduce (XLU) then cheap leading-axis reduce
        ps = jnp.sum(xv, axis=2, keepdims=True)             # (n_tile, c_tile, 1)
        sum_ref[...] += jnp.sum(ps, axis=0)                 # (c_tile, 1)
        ps2 = jnp.sum(xv * xv, axis=2, keepdims=True)
        sumsq_ref[...] += jnp.sum(ps2, axis=0)

    # ---- phase 0: single-pass accumulation; mask ONLY the ragged tail tile ----
    @pl.when(p == 0)
    def _accumulate():
        x = x_ref[...].astype(jnp.float32)                  # (n_tile, c_tile, s_tile)
        if mask_lanes:
            @pl.when(s == last_s)
            def _tail():
                lane = jax.lax.broadcasted_iota(jnp.int32, x.shape, 2)
                _acc(jnp.where(s * s_tile + lane < hw, x, 0.0))

            @pl.when(s != last_s)
            def _full():
                _acc(x)
        else:
            _acc(x)

    # ---- end of phase 0: fold stats + affine into per-channel scale/shift ----
    @pl.when(jnp.logical_and(p == 0, jnp.logical_and(n == last_n, s == last_s)))
    def _finalize():
        inv_cnt = jnp.float32(1.0 / count)
        mean = sum_ref[...] * inv_cnt
        # TODO(synk): single-pass E[x^2]-E[x]^2 can lose precision for huge counts
        #             with large means; the guard keeps var >= 0 (biased var, torch BN).
        var = jnp.maximum(sumsq_ref[...] * inv_cnt - mean * mean, 0.0)
        a = gamma_ref[...] * jax.lax.rsqrt(var + jnp.float32(eps))
        scale_ref[...] = a
        shift_ref[...] = beta_ref[...] - mean * a

    # ---- phase 1: apply y = scale * x + shift ----
    @pl.when(p == 1)
    def _apply():
        x = x_ref[...].astype(jnp.float32)
        y = scale_ref[...][None, :, :] * x + shift_ref[...][None, :, :]
        o_ref[...] = y.astype(o_ref.dtype)


def dynamic_batchnorm2d(x, gamma, beta, *, eps=1e-5, force_tiled=False):
    """Forward of DynamicBatchNorm2d (training-mode batch statistics).

    x:     (N, C, H, W)  with C <= max_feature_dim
    gamma: (max_feature_dim,)  -> uses [:C]
    beta:  (max_feature_dim,)  -> uses [:C]
    """
    N, C, H, W = x.shape
    hw = H * W
    count = N * hw

    # Free view (no data movement): NCHW -> (N, C, H*W); H*W on the lane axis.
    x3 = x.reshape(N, C, hw)
    g = gamma[:C].astype(jnp.float32).reshape(C, 1)
    b = beta[:C].astype(jnp.float32).reshape(C, 1)

    itemsize = jnp.dtype(x.dtype).itemsize
    sub = {4: 8, 2: 16, 1: 32}.get(itemsize, 8)     # sublane packing multiple
    LANE = 128

    # --- generation-derived VMEM budget (v5e/v6e: 128 MiB phys -> 64 MiB budget;
    #     v7x: 64 MiB phys -> 32 MiB budget) ---
    try:
        phys = int(pltpu.get_tpu_info().vmem_capacity_bytes)
    except Exception:
        phys = 64 * 1024 * 1024
    budget = max(16 * 1024 * 1024, min(phys // 2, 64 * 1024 * 1024))

    # --- channel tiling: at least 2 blocks when C is big enough (v7x megacore),
    #     multiple of the sublane pack; ragged last block rows are garbage whose
    #     stats/outputs never reach valid channels (OOB writeback is discarded). ---
    if C <= 2 * sub:
        c_tile = C                                   # full dim allowed even if < 8
    else:
        c_tile = min(128, _round_up(pl.cdiv(C, 2), sub))

    # ---------------- FAST path: whole channel slab resident in VMEM ----------
    def _fast_fits(ct):
        slab_io = N * ct * hw * itemsize             # in/out block (x dtype)
        slab_f32 = N * ct * hw * 4                   # f32 temporaries
        # 2x double-buffered in + 2x out + ~f32 temporaries, with headroom
        return (4 * slab_io + 4 * slab_f32) <= budget

    fast_c = c_tile
    if not force_tiled:
        while not _fast_fits(fast_c):
            if fast_c > sub and fast_c % sub == 0:
                nxt = max(sub, (fast_c // 2 // sub) * sub)
                if nxt == fast_c:
                    break
                fast_c = nxt
            else:
                break

    if (not force_tiled) and _fast_fits(fast_c):
        c_tile_f = fast_c
        num_c = pl.cdiv(C, c_tile_f)
        kernel = functools.partial(_bn_resident_kernel, eps=eps, count=count)
        out3 = pl.pallas_call(
            kernel,
            out_shape=jax.ShapeDtypeStruct((N, C, hw), x.dtype),
            grid_spec=pltpu.PrefetchScalarGridSpec(
                num_scalar_prefetch=0,
                grid=(num_c,),
                in_specs=[
                    pl.BlockSpec((N, c_tile_f, hw), lambda c: (0, c, 0)),
                    pl.BlockSpec((c_tile_f, 1), lambda c: (c, 0)),
                    pl.BlockSpec((c_tile_f, 1), lambda c: (c, 0)),
                ],
                out_specs=pl.BlockSpec((N, c_tile_f, hw), lambda c: (0, c, 0)),
            ),
            compiler_params=pltpu.CompilerParams(
                dimension_semantics=("parallel",),
                vmem_limit_bytes=budget,
            ),
        )(x3, g, b)
        return out3.reshape(N, C, H, W)

    # ---------------- TILED two-phase path ------------------------------------
    # spatial tile: multiple of 128 (lane-dense stores) or the full dim; only the
    # ragged tail tile is masked during stats.
    s_cap = 2048
    if hw <= LANE:
        s_tile = hw                                  # full dim (allowed even if <128)
    elif hw <= s_cap:
        s_tile = _round_up(hw, LANE)                 # single spatial tile
    else:
        s_tile = s_cap
    num_s = pl.cdiv(hw, s_tile)
    mask_lanes = (hw % s_tile) != 0

    num_c = pl.cdiv(C, c_tile)

    # batch tiling: target ~2 MiB x-blocks; pick a divisor of N so no batch-tail
    # masking is required.
    target_block_bytes = 2 * 1024 * 1024
    per_n = c_tile * s_tile * itemsize
    n_target = max(1, min(N, target_block_bytes // per_n))
    n_tile = max(d for d in range(1, n_target + 1) if N % d == 0)
    num_n = N // n_tile

    grid = (num_c, 2, num_n, num_s)                  # (channel, phase, batch, spatial)

    kernel = functools.partial(
        _bn_tiled_kernel, eps=eps, count=count, hw=hw,
        s_tile=s_tile, mask_lanes=mask_lanes)

    out3 = pl.pallas_call(
        kernel,
        out_shape=jax.ShapeDtypeStruct((N, C, hw), x.dtype),
        grid_spec=pltpu.PrefetchScalarGridSpec(
            num_scalar_prefetch=0,
            grid=grid,
            in_specs=[
                # x tile: same block re-read in both phases.
                pl.BlockSpec((n_tile, c_tile, s_tile), lambda c, p, n, s: (n, c, s)),
                # per-channel params, indexed by the channel grid axis only.
                pl.BlockSpec((c_tile, 1), lambda c, p, n, s: (c, 0)),
                pl.BlockSpec((c_tile, 1), lambda c, p, n, s: (c, 0)),
            ],
            # During the stats phase (p==0) the output index is pinned to the first
            # block of this channel tile (never written -> no writeback); during the
            # apply phase (p==1) it tracks (n, c, s).
            out_specs=pl.BlockSpec((n_tile, c_tile, s_tile),
                                   lambda c, p, n, s: (n * p, c, s * p)),
            scratch_shapes=[
                pltpu.VMEM((c_tile, 1), jnp.float32),   # sum(x)
                pltpu.VMEM((c_tile, 1), jnp.float32),   # sum(x*x)
                pltpu.VMEM((c_tile, 1), jnp.float32),   # scale = gamma * inv_std
                pltpu.VMEM((c_tile, 1), jnp.float32),   # shift = beta - mean * scale
            ],
        ),
        compiler_params=pltpu.CompilerParams(
            dimension_semantics=("parallel", "arbitrary", "arbitrary", "arbitrary"),
            vmem_limit_bytes=budget,
        ),
    )(x3, g, b)

    return out3.reshape(N, C, H, W)


def _reference_bn(x, gamma, beta, eps=1e-5):
    N, C, H, W = x.shape
    xf = x.astype(jnp.float32)
    mean = jnp.mean(xf, axis=(0, 2, 3), keepdims=True)
    var = jnp.mean((xf - mean) ** 2, axis=(0, 2, 3), keepdims=True)
    g = gamma[:C].astype(jnp.float32).reshape(1, C, 1, 1)
    b = beta[:C].astype(jnp.float32).reshape(1, C, 1, 1)
    return (g * (xf - mean) / jnp.sqrt(var + eps) + b).astype(x.dtype)


if __name__ == "__main__":
    # Module config: max_feature_dim = 8, actual feature_dim (C of input) = 4.
    max_feature_dim = 8
    N, C, H, W = 2, 4, 16, 16

    key = jax.random.PRNGKey(0)
    kx, kg, kb = jax.random.split(key, 3)
    x = jax.random.normal(kx, (N, C, H, W), dtype=jnp.float32)
    # nn.BatchNorm2d default init is weight=1, bias=0; use deterministic random
    # values instead so the affine broadcast is actually exercised.
    gamma = 1.0 + 0.1 * jax.random.normal(kg, (max_feature_dim,), dtype=jnp.float32)
    beta = 0.1 * jax.random.normal(kb, (max_feature_dim,), dtype=jnp.float32)

    y_ref = _reference_bn(x, gamma, beta)

    # VMEM-resident fast path (default at this size): 1 read + 1 write of x.
    y_fast = jax.block_until_ready(dynamic_batchnorm2d(x, gamma, beta))
    assert y_fast.shape == (N, C, H, W)
    assert jnp.allclose(y_fast, y_ref, atol=1e-4, rtol=1e-4), "fast path mismatch"

    # Tiled two-phase streaming path (forced) on the same inputs.
    y_tiled = jax.block_until_ready(
        dynamic_batchnorm2d(x, gamma, beta, force_tiled=True))
    assert jnp.allclose(y_tiled, y_ref, atol=1e-4, rtol=1e-4), "tiled path mismatch"

    # Ragged case: H*W = 196 (not a multiple of 128 -> masked tail lanes) and a
    # ragged channel block (C=24, c_tile=16) — exercises both masking paths.
    N2, C2, H2, W2 = 3, 24, 14, 14
    mfd2 = 32
    k2x, k2g, k2b = jax.random.split(jax.random.PRNGKey(1), 3)
    x2 = jax.random.normal(k2x, (N2, C2, H2, W2), dtype=jnp.float32)
    g2 = 1.0 + 0.1 * jax.random.normal(k2g, (mfd2,), dtype=jnp.float32)
    b2 = 0.1 * jax.random.normal(k2b, (mfd2,), dtype=jnp.float32)
    y2_ref = _reference_bn(x2, g2, b2)

    y2_tiled = jax.block_until_ready(
        dynamic_batchnorm2d(x2, g2, b2, force_tiled=True))
    assert jnp.allclose(y2_tiled, y2_ref, atol=1e-4, rtol=1e-4), "ragged tiled mismatch"

    y2_fast = jax.block_until_ready(dynamic_batchnorm2d(x2, g2, b2))
    assert jnp.allclose(y2_fast, y2_ref, atol=1e-4, rtol=1e-4), "ragged fast mismatch"

    print("KERNEL_OK")
</pallas_src>

<mosaic_0001>
module attributes {stable_mosaic.version = 11 : i64} {
  func.func @_bn_resident_kernel(%arg0: i32, %arg1: memref<2x4x256xf32, #tpu.memory_space<vmem>>, %arg2: memref<4x1xf32, #tpu.memory_space<vmem>>, %arg3: memref<4x1xf32, #tpu.memory_space<vmem>>, %arg4: memref<2x4x256xf32, #tpu.memory_space<vmem>>) attributes {dimension_semantics = [#tpu.dimension_semantics<parallel>], iteration_bounds = array<i64: 1>, scalar_prefetch = 0 : i64, scratch_operands = 0 : i64, tpu.core_type = #tpu.core_type<tc>, window_params = [{transform_indices = @transform_0, window_bounds = array<i64: 2, 4, 256>}, {transform_indices = @transform_1, window_bounds = array<i64: 4, 1>}, {transform_indices = @transform_2, window_bounds = array<i64: 4, 1>}, {transform_indices = @transform_3, window_bounds = array<i64: 2, 4, 256>}]} {
    %c0 = arith.constant 0 : index
    %c0_0 = arith.constant 0 : index
    %c0_1 = arith.constant 0 : index
    %0 = vector.load %arg1[%c0, %c0_0, %c0_1] : memref<2x4x256xf32, #tpu.memory_space<vmem>>, vector<2x4x256xf32>
    %cst = arith.constant dense<0.000000e+00> : vector<2x4xf32>
    %1 = vector.multi_reduction <add>, %0, %cst [2] : vector<2x4x256xf32> to vector<2x4xf32>
    %2 = vector.shape_cast %1 : vector<2x4xf32> to vector<2x4x1xf32>
    %cst_2 = arith.constant dense<0.000000e+00> : vector<4x1xf32>
    %3 = vector.multi_reduction <add>, %2, %cst_2 [0] : vector<2x4x1xf32> to vector<4x1xf32>
    %4 = vector.shape_cast %3 : vector<4x1xf32> to vector<1x4x1xf32>
    %cst_3 = arith.constant 0.001953125 : f32
    %5 = vector.broadcast %cst_3 : f32 to vector<1x4x1xf32>
    %6 = arith.mulf %4, %5 : vector<1x4x1xf32>
    %7 = vector.broadcast %6 : vector<1x4x1xf32> to vector<2x4x256xf32>
    %8 = arith.subf %0, %7 : vector<2x4x256xf32>
    %9 = arith.mulf %8, %8 : vector<2x4x256xf32>
    %cst_4 = arith.constant dense<0.000000e+00> : vector<2x4xf32>
    %10 = vector.multi_reduction <add>, %9, %cst_4 [2] : vector<2x4x256xf32> to vector<2x4xf32>
    %11 = vector.shape_cast %10 : vector<2x4xf32> to vector<2x4x1xf32>
    %cst_5 = arith.constant dense<0.000000e+00> : vector<4x1xf32>
    %12 = vector.multi_reduction <add>, %11, %cst_5 [0] : vector<2x4x1xf32> to vector<4x1xf32>
    %13 = vector.shape_cast %12 : vector<4x1xf32> to vector<1x4x1xf32>
    %cst_6 = arith.constant 0.001953125 : f32
    %14 = vector.broadcast %cst_6 : f32 to vector<1x4x1xf32>
    %15 = arith.mulf %13, %14 : vector<1x4x1xf32>
    %c0_7 = arith.constant 0 : index
    %c0_8 = arith.constant 0 : index
    %16 = vector.load %arg2[%c0_7, %c0_8] : memref<4x1xf32, #tpu.memory_space<vmem>>, vector<4x1xf32>
    %17 = vector.shape_cast %16 : vector<4x1xf32> to vector<1x4x1xf32>
    %cst_9 = arith.constant 9.99999974E-6 : f32
    %18 = vector.broadcast %cst_9 : f32 to vector<1x4x1xf32>
    %19 = arith.addf %15, %18 : vector<1x4x1xf32>
    %20 = math.rsqrt %19 : vector<1x4x1xf32>
    %21 = arith.mulf %17, %20 : vector<1x4x1xf32>
    %c0_10 = arith.constant 0 : index
    %c0_11 = arith.constant 0 : index
    %22 = vector.load %arg3[%c0_10, %c0_11] : memref<4x1xf32, #tpu.memory_space<vmem>>, vector<4x1xf32>
    %23 = vector.shape_cast %22 : vector<4x1xf32> to vector<1x4x1xf32>
    %24 = vector.broadcast %21 : vector<1x4x1xf32> to vector<2x4x256xf32>
    %25 = arith.mulf %24, %8 : vector<2x4x256xf32>
    %26 = vector.broadcast %23 : vector<1x4x1xf32> to vector<2x4x256xf32>
    %27 = arith.addf %25, %26 : vector<2x4x256xf32>
    %c0_12 = arith.constant 0 : index
    %c0_13 = arith.constant 0 : index
    %c0_14 = arith.constant 0 : index
    %28 = vector.load %arg4[%c0_12, %c0_13, %c0_14] : memref<2x4x256xf32, #tpu.memory_space<vmem>>, vector<2x4x256xf32>
    tpu.vector_store %arg4[%c0_12, %c0_13, %c0_14], %27 {strides = array<i32>} : memref<2x4x256xf32, #tpu.memory_space<vmem>>, vector<2x4x256xf32>,
    return
  }
  func.func @transform_0(%arg0: i32) -> (i32, i32, i32) {
    %c0_i32 = arith.constant 0 : i32
    %c0_i32_0 = arith.constant 0 : i32
    %c0_i32_1 = arith.constant 0 : i32
    return %c0_i32, %arg0, %c0_i32_0 : i32, i32, i32
  }
  func.func @transform_1(%arg0: i32) -> (i32, i32) {
    %c0_i32 = arith.constant 0 : i32
    %c0_i32_0 = arith.constant 0 : i32
    return %arg0, %c0_i32 : i32, i32
  }
  func.func @transform_2(%arg0: i32) -> (i32, i32) {
    %c0_i32 = arith.constant 0 : i32
    %c0_i32_0 = arith.constant 0 : i32
    return %arg0, %c0_i32 : i32, i32
  }
  func.func @transform_3(%arg0: i32) -> (i32, i32, i32) {
    %c0_i32 = arith.constant 0 : i32
    %c0_i32_0 = arith.constant 0 : i32
    %c0_i32_1 = arith.constant 0 : i32
    return %c0_i32, %arg0, %c0_i32_0 : i32, i32, i32
  }
}

</mosaic_0001>

<bundles_post_ra>
// kernel: tpu_custom_call.1
= control target key start
LH: loop header
LB: loop body
LE: loop exit
PB: predicated region body
PF: predicated region fallthrough
CT: control target
= control target key end

     0   :  { %8 = vsyncpa [#allocation3], 0  ;;  %s294_s0 = inlined_call_operand.hbm [shape: f32[2,4,256], index: 0, kind: input, shape index: {}]   ;;  %s295_s1 = inlined_call_operand.vmem [shape: f32[4,1], index: 1, kind: input, shape index: {}]   ;;  %s296_s2 = inlined_call_operand.vmem [shape: f32[4,1], index: 2, kind: input, shape index: {}]   ;;  %s297_s3 = inlined_call_operand.hbm [shape: f32[2,4,256], index: 3, kind: output, shape index: {}]  }
   0x1   :  { %9 = vsyncpa [#allocation4], 0  ;;  %s14_s14 = sshll.u32 %s294_s0, 4  ;;  %s236_s15 = smov [#allocation2]   ;;  %s15_s14 = int_to_ptr.hbm [resolvable:$true] %s14_s14 }
   0x2   :  { %s16_s16 = sshll.u32 %s236_s15, 4  ;;  %s237_s17 = smov 128   ;;  %s17_s16 = int_to_ptr.vmem [resolvable:$true] %s16_s16 }
   0x3   :  { %s238_s18 = smov 8  }
   0x4   :  { %22 = dma.hbm_to_vmem [thread:$0]  %s15_s14, 256, %s17_s16, [#allocation3], %s237_s17, %s237_s17, %s238_s18  }
   0x5   :  { %232 = dma.done.wait [#allocation3], 256  }
   0x6   :  { %233 = vsyncadd [#allocation3], 4294967040  ;;  %v31_v0 = vld [vmem:[#allocation2] sm:$0xff]  ;;  %v32_v1 = vld [vmem:[#allocation2 + $0x8] sm:$0xff]  ;;  %vm46_vm0 = vcmask 1043456   ;;  %v240_v36 = vmov 0  }
   0x7   :  { %35 = vst [vmem:[#allocation1] ss:$2 sm:$0xff] %v31_v0  ;;  %v239_v13 = vmov 839922192   ;;  %180 = vset.pattern.permute.xlu2 %v240_v36  ;;  %181 = vset.pattern.permute.xlu0 %v240_v36  ;;  %v98_v49 = vld [vmem:[%s295_s1] sm:$0xf] }
   0x8   :  { %39 = vst [vmem:[#allocation1 + $0x10] ss:$2 sm:$0xff] %v32_v1  ;;  %v63_v14 = vunpack.c.l.s4 %v239_v13  ;;  %v111_v53 = vld [vmem:[%s296_s2] sm:$0xf]  ;;  %s241_s1 = smov [#allocation5]   ;;  %s161_s25 = sshll.u32 %s297_s3, 4  ;;  %s162_s25 = int_to_ptr.hbm [resolvable:$true] %s161_s25 }
   0x9   :  { %s159_s22 = sshll.u32 %s241_s1, 4  ;;  %s160_s22 = int_to_ptr.vmem [resolvable:$true] %s159_s22 }
   0xa   :  { %v64_v18 = vunpack.c.0.s8 %v63_v14 }
   0xe   :  { %v36_v2 = vld.sshfl [vmem:[#allocation1] sm:$0xff pattern:$0x75316420]  ;;  %v37_v3 = vld.sshfl [vmem:[#allocation1 + $0x8] sm:$0xff pattern:$0x75316420] }
   0xf   :  { %v47_v4 = vsel %vm46_vm0, %v36_v2, 0.0  ;;  %v48_v5 = vsel %vm46_vm0, %v37_v3, 0.0  ;;  %v40_v7 = vld.sshfl [vmem:[#allocation1 + $0x10] sm:$0xff pattern:$0x75316420] }
  0x10   :  { %v49_v6 = vadd.f32 %v48_v5, %v47_v4  ;;  %v41_v8 = vld.sshfl [vmem:[#allocation1 + $0x18] sm:$0xff pattern:$0x75316420]  ;;  %v52_v9 = vsel %vm46_vm0, %v40_v7, 0.0 }
  0x11   :  { %v53_v10 = vsel %vm46_vm0, %v41_v8, 0.0 }
  0x12   :  { %50 = vadd.xlane.f32.xlu0 %v49_v6  ;;  %v54_v11 = vadd.f32 %v53_v10, %v52_v9 }
  0x1a   :  { %55 = vadd.xlane.f32.xlu0 %v54_v11 }
  0x85   :  { %v51_v12 = vpop.xlane.xlu0 %50 }
  0x86   :  { %v57_v16 = vsel %vm46_vm0, %v51_v12, 0.0 }
  0x8d   :  { %v56_v15 = vpop.xlane.xlu0 %55 }
  0x8e   :  { %v58_v17 = vsel %vm46_vm0, %v56_v15, 0.0 }
  0x8f   :  { %v59_v19 = vadd.f32 %v58_v17, %v57_v16 }
  0x91   :  { %v60_v20 = vmul.f32 0.001953125, %v59_v19 }
  0x93   :  { %v65_v21 = vperm.slane %v60_v20, %v64_v18 }
  0x95   :  { %v67_v22 = vsub.f32 %v31_v0, %v65_v21  ;;  %v68_v23 = vsub.f32 %v32_v1, %v65_v21 }
  0x97   :  { %v69_v24 = vmul.f32 %v67_v22, %v67_v22  ;;  %v70_v25 = vmul.f32 %v68_v23, %v68_v23 }
  0x99   :  { %73 = vst [vmem:[#allocation1] ss:$2 sm:$0xff] %v69_v24 }
  0x9a   :  { %77 = vst [vmem:[#allocation1 + $0x10] ss:$2 sm:$0xff] %v70_v25 }
  0xa0   :  { %v74_v26 = vld.sshfl [vmem:[#allocation1] sm:$0xff pattern:$0x75316420]  ;;  %v75_v27 = vld.sshfl [vmem:[#allocation1 + $0x8] sm:$0xff pattern:$0x75316420] }
  0xa1   :  { %v84_v28 = vsel %vm46_vm0, %v74_v26, 0.0  ;;  %v85_v29 = vsel %vm46_vm0, %v75_v27, 0.0  ;;  %119 = vst [vmem:[#allocation1] ss:$2 sm:$0xff] %v67_v22 }
  0xa2   :  { %v86_v30 = vadd.f32 %v85_v29, %v84_v28  ;;  %v78_v31 = vld.sshfl [vmem:[#allocation1 + $0x10] sm:$0xff pattern:$0x75316420]  ;;  %v79_v32 = vld.sshfl [vmem:[#allocation1 + $0x18] sm:$0xff pattern:$0x75316420] }
  0xa3   :  { %123 = vst [vmem:[#allocation1 + $0x10] ss:$2 sm:$0xff] %v68_v23  ;;  %v89_v33 = vsel %vm46_vm0, %v78_v31, 0.0  ;;  %v90_v34 = vsel %vm46_vm0, %v79_v32, 0.0 }
  0xa4   :  { %87 = vadd.xlane.f32.xlu1 %v86_v30  ;;  %v91_v35 = vadd.f32 %v90_v34, %v89_v33 }
  0xa8   :  { %v121_v55 = vld.sshfl [vmem:[#allocation1 + $0x8] sm:$0xff pattern:$0x75316420]  ;;  %v120_v59 = vld.sshfl [vmem:[#allocation1] sm:$0xff pattern:$0x75316420] }
  0xaa   :  { %v125_v56 = vld.sshfl [vmem:[#allocation1 + $0x18] sm:$0xff pattern:$0x75316420]  ;;  %v124_v60 = vld.sshfl [vmem:[#allocation1 + $0x10] sm:$0xff pattern:$0x75316420] }
  0xac   :  { %92 = vadd.xlane.f32.xlu1 %v91_v35 }
 0x117   :  { %v88_v37 = vpop.xlane.xlu1 %87 }
 0x118   :  { %v94_v39 = vsel %vm46_vm0, %v88_v37, 0.0 }
 0x11f   :  { %v93_v38 = vpop.xlane.xlu1 %92 }
 0x120   :  { %v95_v40 = vsel %vm46_vm0, %v93_v38, 0.0 }
 0x121   :  { %v96_v41 = vadd.f32 %v95_v40, %v94_v39 }
 0x123   :  { %v97_v42 = vmul.f32 0.001953125, %v96_v41 }
 0x125   :  { %v99_v43 = vadd.f32 1e-05, %v97_v42 }
 0x127   :  { %182 = vrsqrt.f32 %v99_v43  ;;  %vm106_vm2 = vweird.f32 %v99_v43 }
 0x12d   :  { %v183_v44 = vpop.eup %182 }
 0x12e   :  { %v101_v45 = vmul.f32 %v183_v44, %v99_v43  ;;  %vm107_vm1 = vweird.f32 %v183_v44 }
 0x12f   :  { %vm108_vm3 = vmor %vm106_vm2, %vm107_vm1 }
 0x130   :  { %v102_v46 = vmul.f32 %v183_v44, %v101_v45 }
 0x132   :  { %v103_v47 = vmul.f32 0.5, %v102_v46 }
 0x134   :  { %v104_v48 = vsub.f32 1.5, %v103_v47 }
 0x136   :  { %v105_v50 = vmul.f32 %v183_v44, %v104_v48 }
 0x138   :  { %v109_v51 = vsel %vm108_vm3, %v183_v44, %v105_v50 }
 0x139   :  { %v110_v52 = vmul.f32 %v109_v51, %v98_v49 }
 0x13b   :  { %114 = vperm.xlu2 %180, %v110_v52  }
 0x143   :  { %136 = vperm.xlu2 %180, %v111_v53  }
 0x195   :  { %v115_v54 = vpop.permute.xlu2 %114 }
 0x196   :  { %v131_v57 = vmul.f32 %v121_v55, %v115_v54  ;;  %v133_v58 = vmul.f32 %v125_v56, %v115_v54  ;;  %v130_v62 = vmul.f32 %v120_v59, %v115_v54  ;;  %v132_v63 = vmul.f32 %v124_v60, %v115_v54 }
 0x19d   :  { %v137_v61 = vpop.permute.xlu2 %136 }
 0x19e   :  { %v140_v0 = vadd.f32 %v137_v61, %v131_v57  ;;  %v142_v1 = vadd.f32 %v137_v61, %v133_v58  ;;  %v139_v2 = vadd.f32 %v137_v61, %v130_v62  ;;  %v141_v3 = vadd.f32 %v137_v61, %v132_v63 }
 0x1a0   :  { %v147_v4 = vrot.slane %v140_v0, 4  ;;  %v148_v5 = vrot.slane %v142_v1, 4 }
 0x1a2   :  { %v149_v6 = vsel %vm46_vm0, %v139_v2, %v147_v4  ;;  %v150_v7 = vsel %vm46_vm0, %v141_v3, %v148_v5 }
 0x1a3   :  { %153 = vst [vmem:[#allocation5] sm:$0xff] %v149_v6 }
 0x1a4   :  { %154 = vst [vmem:[#allocation5 + $0x8] sm:$0xff] %v150_v7 }
 0x1a5   :  { %167 = dma.vmem_to_hbm [thread:$0]  %s160_s22, 256, %s162_s25, [#allocation4], %s237_s17, %s237_s17, %s238_s18  }
 0x1a6   :  { %234 = dma.done.wait [#allocation4], 256  }
 0x1a7   :  { %235 = vsyncadd [#allocation4], 4294967040 }
 0x1a8   :  { %172 = vsyncpa [#allocation3], 1 }
 0x1a9   :  { %173 = vsyncpa [#allocation4], 1 }

</bundles_post_ra>
